<compile_context>
chip_gen: v5e
topology: v5e:2x2
jax: 0.10.0
libtpu: 0.0.40
codegen_flags: <defaults>
</compile_context>

<pallas_src>
import functools

import jax
import jax.numpy as jnp
import numpy as np
from jax import lax
from jax.experimental import pallas as pl
from jax.experimental.pallas import tpu as pltpu

_MIB = 1024 * 1024


def _exp_arg(a, b, x):
    """e = a*|x - x^3| + b*|x + x^3|, factorized as a*|u - u*x^2| + b*(u + u*x^2)."""
    x2 = x * x
    u = jnp.abs(x)
    q = u * x2                       # == |x|^3 == |x^3|
    return a * jnp.abs(u - q) + b * (u + q)


# ----------------------------- Pass 1: per-block column min/max of exponent ----
def _minmax_kernel(ab_ref, sent_ref, w_lin_ref, b_lin_ref, min_ref, max_ref,
                   *, total_rows):
    tm = sent_ref.shape[0]
    a = ab_ref[0]
    b = ab_ref[1]
    x = sent_ref[...] * w_lin_ref[...] + b_lin_ref[...]        # (tm, H) f32
    e = _exp_arg(a, b, x)                                       # no exp here (monotone)
    if total_rows % tm != 0:
        # Ragged last block: mask padded rows out of the reduction.
        row0 = pl.program_id(0) * tm
        rows = lax.broadcasted_iota(jnp.int32, (tm, 1), 0) + row0
        valid = rows < total_rows
        e_min = jnp.where(valid, e, jnp.inf)
        e_max = jnp.where(valid, e, -jnp.inf)
    else:
        e_min = e
        e_max = e
    h = e.shape[-1]
    # Vector (VPU) accumulation within the block; single sublane reduce per block.
    min_ref[...] = jnp.min(e_min, axis=0, keepdims=True).reshape(1, 1, h)
    max_ref[...] = jnp.max(e_max, axis=0, keepdims=True).reshape(1, 1, h)


# ----------------------------- Pass 2: tiled elementwise apply ------------------
def _apply_kernel(ab_ref, sent_ref, hidden_ref, w_lin_ref, b_lin_ref,
                  wk_ref, wkr_ref, out_ref):
    a = ab_ref[0]
    b = ab_ref[1]
    x = sent_ref[...] * w_lin_ref[...] + b_lin_ref[...]        # (tm, H) f32
    raw = jnp.exp(_exp_arg(a, b, x))
    # weight * scale * (raw - rmin)/(rmax - rmin) * tanh(x) == (wk*raw - wkr)*tanh(x)
    act = (wk_ref[...] * raw - wkr_ref[...]) * jnp.tanh(x)
    # Final multiply in the hidden/output dtype (bf16 stays bf16; f32 stays f32).
    out_ref[...] = hidden_ref[...] * act.astype(out_ref.dtype)


# ----------------------------- host-side helpers --------------------------------
def _vmem_capacity_bytes():
    try:
        return int(pltpu.get_tpu_info().vmem_capacity_bytes)
    except Exception:
        return 64 * _MIB     # conservative fallback (v7x-sized)


def _pick_block_rows(M, H, itemsize, target_bytes, requested=None):
    """Rows per block: ~target_bytes of the tiled operand, dtype-aware alignment."""
    if requested is not None:
        return max(1, min(int(requested), M))
    align = 8 if itemsize >= 4 else 16            # bf16 sublane packing wants 16
    tm = max(align, (target_bytes // (H * itemsize)) // align * align)
    if tm >= M:
        return M                                  # single full-extent (small) block
    return int(tm)


def _vmem_limit(rows, H, io_itemsize_sum, cap):
    """Right-size the scoped VMEM limit from the double-buffered footprint."""
    est = 2 * rows * H * io_itemsize_sum          # double-buffered in+out tiles
    est += 8 * rows * H * 4                       # generous budget for f32 temporaries
    est += 2 * _MIB                               # params / slack
    return int(max(32 * _MIB, min(est, (cap * 3) // 4)))


def sentiment_attention(hidden_states, sentiment_scores, params, block_rows=None):
    B, S, H = hidden_states.shape
    M = B * S
    out_dtype = hidden_states.dtype
    io_item = jnp.dtype(out_dtype).itemsize

    hidden2d = hidden_states.reshape(M, H)            # free reshape, no cast of big tensor
    sent2d = sentiment_scores.reshape(M, 1).astype(jnp.float32)

    a = params["a"].reshape(()).astype(jnp.float32)
    b = params["b"].reshape(()).astype(jnp.float32)
    scale = params["scale"].reshape(()).astype(jnp.float32)
    ab = jnp.stack([a, b])                                     # (2,) -> SMEM
    w_lin = params["lin_w"].reshape(1, H).astype(jnp.float32)  # Linear weight (H,1) -> (1,H)
    b_lin = params["lin_b"].reshape(1, H).astype(jnp.float32)
    w_attn = params["weight"].reshape(1, H).astype(jnp.float32)

    cap = _vmem_capacity_bytes()
    base_target = (4 if cap >= 96 * _MIB else 2) * _MIB   # bigger tiles on 128 MiB chips

    # ---- Pass 1: block-parallel min/max of the exponent argument (no hidden traffic).
    tm1 = _pick_block_rows(M, H, 4, 2 * base_target, block_rows)
    g1 = pl.cdiv(M, tm1)
    part_min, part_max = pl.pallas_call(
        functools.partial(_minmax_kernel, total_rows=M),
        out_shape=(jax.ShapeDtypeStruct((g1, 1, H), jnp.float32),
                   jax.ShapeDtypeStruct((g1, 1, H), jnp.float32)),
        grid=(g1,),
        in_specs=[
            pl.BlockSpec(memory_space=pltpu.SMEM),             # [a, b]
            pl.BlockSpec((tm1, 1), lambda i: (i, 0)),          # sentiment scores
            pl.BlockSpec((1, H), lambda i: (0, 0)),            # linear weight
            pl.BlockSpec((1, H), lambda i: (0, 0)),            # linear bias
        ],
        out_specs=(pl.BlockSpec((1, 1, H), lambda i: (i, 0, 0)),
                   pl.BlockSpec((1, 1, H), lambda i: (i, 0, 0))),
        compiler_params=pltpu.CompilerParams(
            dimension_semantics=("parallel",),
            vmem_limit_bytes=_vmem_limit(tm1, H, 0, cap)),
    )(ab, sent2d, w_lin, b_lin)

    # ---- Tiny exact scalar/per-column finish (exp is monotone, so min/max carry over).
    emin = jnp.min(part_min)
    emax = jnp.max(part_max)
    rmin = jnp.exp(emin)
    k = scale / (jnp.exp(emax) - rmin)     # matches reference (div-by-zero if e constant)
    wk = w_attn * k                        # (1,H): weight * scale / (rmax - rmin)
    wkr = wk * rmin                        # (1,H): wk * rmin

    # ---- Pass 2: the streaming elementwise apply over hidden_states.
    tm2 = _pick_block_rows(M, H, io_item, base_target, block_rows)
    g2 = pl.cdiv(M, tm2)
    out = pl.pallas_call(
        _apply_kernel,
        out_shape=jax.ShapeDtypeStruct((M, H), out_dtype),
        grid=(g2,),
        in_specs=[
            pl.BlockSpec(memory_space=pltpu.SMEM),             # [a, b]
            pl.BlockSpec((tm2, 1), lambda i: (i, 0)),          # sentiment scores
            pl.BlockSpec((tm2, H), lambda i: (i, 0)),          # hidden states
            pl.BlockSpec((1, H), lambda i: (0, 0)),            # linear weight
            pl.BlockSpec((1, H), lambda i: (0, 0)),            # linear bias
            pl.BlockSpec((1, H), lambda i: (0, 0)),            # wk
            pl.BlockSpec((1, H), lambda i: (0, 0)),            # wkr
        ],
        out_specs=pl.BlockSpec((tm2, H), lambda i: (i, 0)),
        compiler_params=pltpu.CompilerParams(
            dimension_semantics=("parallel",),
            vmem_limit_bytes=_vmem_limit(tm2, H, 2 * io_item, cap)),
    )(ab, sent2d, hidden2d, w_lin, b_lin, wk, wkr)

    return out.reshape(B, S, H)


def reference_jnp(hidden_states, sentiment_scores, params):
    x = sentiment_scores[..., None] * params["lin_w"].reshape(-1) + params["lin_b"]
    a, b, scale = params["a"][0], params["b"][0], params["scale"][0]
    cubic = jnp.sign(x) * jnp.abs(x) ** 3
    raw = jnp.exp(a * jnp.abs(x - cubic) + b * jnp.abs(x + cubic))
    wts = scale * ((raw - raw.min()) / (raw.max() - raw.min()))
    activated = wts * jnp.tanh(x)
    return hidden_states * params["weight"] * activated


if __name__ == "__main__":
    B, S, H = 2, 12, 32
    a_val, b_val = 0.5, 0.3

    key = jax.random.PRNGKey(0)
    k_h, k_s, k_w, k_b = jax.random.split(key, 4)

    hidden_states = jax.random.normal(k_h, (B, S, H), dtype=jnp.float32)
    sentiment_scores = jax.random.uniform(k_s, (B, S), jnp.float32, -1.0, 1.0)

    # Deterministic parameter init (shapes from the module's __init__):
    # nn.Linear(1, hidden_size): weight (H, 1), bias (H,)
    bound = 1.0  # 1/sqrt(in_features=1)
    params = {
        "lin_w": jax.random.uniform(k_w, (H, 1), jnp.float32, -bound, bound),
        "lin_b": jax.random.uniform(k_b, (H,), jnp.float32, -bound, bound),
        "weight": jnp.ones((H,), jnp.float32),          # nn.Parameter(torch.ones(H))
        "a": jnp.array([a_val], jnp.float32),
        "b": jnp.array([b_val], jnp.float32),
        "scale": jnp.array([1.0], jnp.float32),
    }

    ref = reference_jnp(hidden_states, sentiment_scores, params)

    # f32 path, forced small blocks (M=24, tm=16 -> grid=(2,), ragged last block)
    # to exercise the multi-block grid and the pass-1 row masking.
    out = sentiment_attention(hidden_states, sentiment_scores, params, block_rows=16)
    out = jax.block_until_ready(out)
    np.testing.assert_allclose(np.asarray(out), np.asarray(ref), rtol=1e-5, atol=1e-5)

    # bf16 I/O path (hidden/output stay bf16; activation math in f32; final mul in bf16).
    hidden_bf16 = hidden_states.astype(jnp.bfloat16)
    out_bf16 = jax.block_until_ready(
        sentiment_attention(hidden_bf16, sentiment_scores, params))
    assert out_bf16.dtype == jnp.bfloat16
    np.testing.assert_allclose(np.asarray(out_bf16, dtype=np.float32),
                               np.asarray(ref), rtol=3e-2, atol=3e-2)

    print("KERNEL_OK")
</pallas_src>

<mosaic_0001>
module attributes {stable_mosaic.version = 11 : i64} {
  func.func @_minmax_kernel(%arg0: i32, %arg1: memref<2xf32, #tpu.memory_space<smem>>, %arg2: memref<16x1xf32, #tpu.memory_space<vmem>>, %arg3: memref<1x32xf32, #tpu.memory_space<vmem>>, %arg4: memref<1x32xf32, #tpu.memory_space<vmem>>, %arg5: memref<1x1x32xf32, #tpu.memory_space<vmem>>, %arg6: memref<1x1x32xf32, #tpu.memory_space<vmem>>) attributes {dimension_semantics = [#tpu.dimension_semantics<parallel>], iteration_bounds = array<i64: 2>, scalar_prefetch = 0 : i64, scratch_operands = 0 : i64, tpu.core_type = #tpu.core_type<tc>, window_params = [{transform_indices = @transform_0, window_bounds = array<i64: 2>}, {transform_indices = @transform_1, window_bounds = array<i64: 16, 1>}, {pipeline_mode = #tpu.pipeline_mode<synchronous>, transform_indices = @transform_2, window_bounds = array<i64: 1, 32>}, {pipeline_mode = #tpu.pipeline_mode<synchronous>, transform_indices = @transform_3, window_bounds = array<i64: 1, 32>}, {transform_indices = @transform_4, window_bounds = array<i64: 1, 1, 32>}, {transform_indices = @transform_5, window_bounds = array<i64: 1, 1, 32>}]} {
    %c0 = arith.constant 0 : index
    %0 = memref.load %arg1[%c0] : memref<2xf32, #tpu.memory_space<smem>>
    %c1 = arith.constant 1 : index
    %1 = memref.load %arg1[%c1] : memref<2xf32, #tpu.memory_space<smem>>
    %c0_0 = arith.constant 0 : index
    %c0_1 = arith.constant 0 : index
    %2 = vector.load %arg2[%c0_0, %c0_1] : memref<16x1xf32, #tpu.memory_space<vmem>>, vector<16x1xf32>
    %c0_2 = arith.constant 0 : index
    %c0_3 = arith.constant 0 : index
    %3 = vector.load %arg3[%c0_2, %c0_3] : memref<1x32xf32, #tpu.memory_space<vmem>>, vector<1x32xf32>
    %4 = vector.broadcast %2 : vector<16x1xf32> to vector<16x32xf32>
    %5 = vector.broadcast %3 : vector<1x32xf32> to vector<16x32xf32>
    %6 = arith.mulf %4, %5 : vector<16x32xf32>
    %c0_4 = arith.constant 0 : index
    %c0_5 = arith.constant 0 : index
    %7 = vector.load %arg4[%c0_4, %c0_5] : memref<1x32xf32, #tpu.memory_space<vmem>>, vector<1x32xf32>
    %8 = vector.broadcast %7 : vector<1x32xf32> to vector<16x32xf32>
    %9 = arith.addf %6, %8 : vector<16x32xf32>
    %10 = arith.mulf %9, %9 : vector<16x32xf32>
    %11 = math.absf %9 : vector<16x32xf32>
    %12 = arith.mulf %11, %10 : vector<16x32xf32>
    %13 = arith.subf %11, %12 : vector<16x32xf32>
    %14 = math.absf %13 : vector<16x32xf32>
    %15 = vector.broadcast %0 : f32 to vector<16x32xf32>
    %16 = arith.mulf %15, %14 : vector<16x32xf32>
    %17 = arith.addf %11, %12 : vector<16x32xf32>
    %18 = vector.broadcast %1 : f32 to vector<16x32xf32>
    %19 = arith.mulf %18, %17 : vector<16x32xf32>
    %20 = arith.addf %16, %19 : vector<16x32xf32>
    %c16_i32 = arith.constant 16 : i32
    %21 = arith.muli %arg0, %c16_i32 : i32
    %22 = tpu.iota {dimensions = array<i32: 0>} : vector<16x1xi32>
    %23 = vector.broadcast %21 : i32 to vector<16x1xi32>
    %24 = arith.addi %22, %23 : vector<16x1xi32>
    %c24_i32 = arith.constant 24 : i32
    %25 = vector.broadcast %c24_i32 : i32 to vector<16x1xi32>
    %26 = arith.cmpi slt, %24, %25 : vector<16x1xi32>
    %cst = arith.constant 0x7F800000 : f32
    %27 = vector.shape_cast %26 : vector<16x1xi1> to vector<16x1xi1>
    %28 = vector.broadcast %27 : vector<16x1xi1> to vector<16x32xi1>
    %29 = vector.broadcast %cst : f32 to vector<16x32xf32>
    %30 = arith.select %28, %20, %29 : vector<16x32xi1>, vector<16x32xf32>
    %cst_6 = arith.constant 0xFF800000 : f32
    %31 = vector.shape_cast %26 : vector<16x1xi1> to vector<16x1xi1>
    %32 = vector.broadcast %31 : vector<16x1xi1> to vector<16x32xi1>
    %33 = vector.broadcast %cst_6 : f32 to vector<16x32xf32>
    %34 = arith.select %32, %20, %33 : vector<16x32xi1>, vector<16x32xf32>
    %cst_7 = arith.constant dense<0x7F800000> : vector<32xf32>
    %35 = vector.multi_reduction <minimumf>, %30, %cst_7 [0] : vector<16x32xf32> to vector<32xf32>
    %36 = vector.shape_cast %35 : vector<32xf32> to vector<1x32xf32>
    %37 = vector.shape_cast %36 : vector<1x32xf32> to vector<1x1x32xf32>
    %c0_8 = arith.constant 0 : index
    %c0_9 = arith.constant 0 : index
    %c0_10 = arith.constant 0 : index
    %38 = vector.load %arg5[%c0_8, %c0_9, %c0_10] : memref<1x1x32xf32, #tpu.memory_space<vmem>>, vector<1x1x32xf32>
    tpu.vector_store %arg5[%c0_8, %c0_9, %c0_10], %37 {strides = array<i32>} : memref<1x1x32xf32, #tpu.memory_space<vmem>>, vector<1x1x32xf32>,
    %cst_11 = arith.constant dense<0xFF800000> : vector<32xf32>
    %39 = vector.multi_reduction <maximumf>, %34, %cst_11 [0] : vector<16x32xf32> to vector<32xf32>
    %40 = vector.shape_cast %39 : vector<32xf32> to vector<1x32xf32>
    %41 = vector.shape_cast %40 : vector<1x32xf32> to vector<1x1x32xf32>
    %c0_12 = arith.constant 0 : index
    %c0_13 = arith.constant 0 : index
    %c0_14 = arith.constant 0 : index
    %42 = vector.load %arg6[%c0_12, %c0_13, %c0_14] : memref<1x1x32xf32, #tpu.memory_space<vmem>>, vector<1x1x32xf32>
    tpu.vector_store %arg6[%c0_12, %c0_13, %c0_14], %41 {strides = array<i32>} : memref<1x1x32xf32, #tpu.memory_space<vmem>>, vector<1x1x32xf32>,
    return
  }
  func.func @transform_0(%arg0: i32) -> i32 {
    %c0_i32 = arith.constant 0 : i32
    %c0_i32_0 = arith.constant 0 : i32
    return %c0_i32 : i32
  }
  func.func @transform_1(%arg0: i32) -> (i32, i32) {
    %c0_i32 = arith.constant 0 : i32
    %c0_i32_0 = arith.constant 0 : i32
    return %arg0, %c0_i32 : i32, i32
  }
  func.func @transform_2(%arg0: i32) -> (i32, i32) {
    %c0_i32 = arith.constant 0 : i32
    %c0_i32_0 = arith.constant 0 : i32
    %c0_i32_1 = arith.constant 0 : i32
    return %c0_i32, %c0_i32_0 : i32, i32
  }
  func.func @transform_3(%arg0: i32) -> (i32, i32) {
    %c0_i32 = arith.constant 0 : i32
    %c0_i32_0 = arith.constant 0 : i32
    %c0_i32_1 = arith.constant 0 : i32
    return %c0_i32, %c0_i32_0 : i32, i32
  }
  func.func @transform_4(%arg0: i32) -> (i32, i32, i32) {
    %c0_i32 = arith.constant 0 : i32
    %c0_i32_0 = arith.constant 0 : i32
    %c0_i32_1 = arith.constant 0 : i32
    return %arg0, %c0_i32, %c0_i32_0 : i32, i32, i32
  }
  func.func @transform_5(%arg0: i32) -> (i32, i32, i32) {
    %c0_i32 = arith.constant 0 : i32
    %c0_i32_0 = arith.constant 0 : i32
    %c0_i32_1 = arith.constant 0 : i32
    return %arg0, %c0_i32, %c0_i32_0 : i32, i32, i32
  }
}

</mosaic_0001>

<bundles_post_ra>
// kernel: tpu_custom_call.1
= control target key start
LH: loop header
LB: loop body
LE: loop exit
PB: predicated region body
PF: predicated region fallthrough
CT: control target
= control target key end

     0   :  { %11 = vsyncpa [#allocation4], 0  ;;  %s831_s0 = inlined_call_operand.vmem [shape: f32[2], index: 0, kind: input, shape index: {}]   ;;  %s832_s1 = inlined_call_operand.vmem [shape: f32[24,1], index: 1, kind: input, shape index: {}]   ;;  %s833_s2 = inlined_call_operand.vmem [shape: f32[1,32], index: 2, kind: input, shape index: {}]   ;;  %s834_s3 = inlined_call_operand.vmem [shape: f32[1,32], index: 3, kind: input, shape index: {}]   ;;  %s835_s4 = inlined_call_operand.hbm [shape: f32[2,1,32], index: 4, kind: output, shape index: {0}]   ;;  %s836_s5 = inlined_call_operand.hbm [shape: f32[2,1,32], index: 5, kind: output, shape index: {1}]  }
   0x1   :  { %12 = vsyncpa [#allocation3], 0 }
   0x2   :  { %14 = vsyncpa [#allocation3 + $0x1], 0 }
   0x3   :  { %15 = vsyncpa [#allocation7], 0 }
   0x4   :  { %17 = vsyncpa [#allocation7 + $0x1], 0  ;;  %s696_s18 = smov 0   ;;  %s698_s19 = smov 0  }
   0x5   :  { %s700_s20 = smov 0   ;;  %s702_s21 = smov 0  }
   0x6 LB: > { %s717_s22 = sadd.s32 4294967295, %s662_s21   ;;  %s478_s23 = sadd.s32 4294967294, %s662_s21   ;;  %s662_s21 = sphi %s702_s21, %s842_s21   ;;  %s658_s20 = sphi %s700_s20, %s841_s20   ;;  %s654_s19 = sphi %s698_s19, %s840_s19   ;;  %s650_s18 = sphi %s696_s18, %s839_s18  }
   0x7   : > { %s721_s24 = sadd.s32 1, %s662_s21   ;;  %s119_s25 = sadd.s32 1, %s658_s20 }
   0x8   : > { %s116_s26 = ssub.s32 %s662_s21, %s721_s24  ;;  %p129_p0 = scmp.ne.s32.totalorder %s658_s20, %s654_s19 }
   0x9   : > { %p117_p1 = scmp.eq.s32.totalorder %s116_s26, 0  ;;  %p130_p2 = scmp.eq.s32.totalorder %s717_s22, 1 }
   0xa   : > { %p135_p3 = scmp.ne.s32.totalorder %s654_s19, %s650_s18  ;;  %p136_p4 = scmp.eq.s32.totalorder %s478_s23, 1 }
   0xb   : > { %s732_s27 = scalar_select %p117_p1, %s658_s20, %s119_s25  }
   0xc   : > { %p734_p5 = por %p130_p2, %p129_p0  ;;  %p738_p6 = por %p136_p4, %p135_p3 }
   0xd   : > { %p479_p7 = scmp.ge.s32.totalorder %s662_s21, 1  ;;  %p169_p8 = scmp.lt.s32.totalorder %s662_s21, 3 }
   0xe   : > { %p509_p9 = scmp.eq.s32.totalorder %s717_s22, 0  ;;  %s181_s7 = sshll.u32 %s831_s0, 4  ;;  %s182_s7 = int_to_ptr.vmem [resolvable:$true] %s181_s7 }
   0xf   : > { %p170_p10 = pnand %p479_p7, %p169_p8  ;;  %s664_s8 = smov [#allocation2]  }
  0x11   : > { %p498_p11 = pneg %p170_p10  ;;  %217 = sbr.rel (%p170_p10) target bundleno = 202 (0xca), region = 36 }
  0x13   : > { %p499_p12 = pnand %p509_p9, %p498_p11 }
  0x15   : > { %501 = dma.vmem_to_smem (!%p499_p12), %s182_s7, 16, %s664_s8, [#allocation4]  }
  0x16   : > { %637 = dma.done.wait (%p509_p9), [#allocation4], 16  }
  0x17   : > { %639 = vsyncadd (%p509_p9), [#allocation4], 4294967280 }
  0x18   : > { %224 = sfence }
  0x19   : > { %s484_s9 = sshll.u32 %s717_s22, 1  ;;  %v665_v0 = vmov 0   ;;  %v547_v3 = vld [vmem:[%s833_s2] ss:$0 sm:$0xff]  ;;  %s268_s23 = sld [smem:[#allocation2]]  ;;  %v315_v11 = vlaneseq  ;;  %vm331_vm2 = vcmask 261120  }
  0x1a   : > { %546 = vset.pattern.permute.xlu0 %v665_v0  ;;  %p259_p13 = scmp.lt.s32.totalorder %s484_s9, 2  ;;  %v548_v4 = vld [vmem:[%s834_s3] ss:$0 sm:$0xff]  ;;  %s486_s25 = sld [smem:[#allocation2 + $0x1]]  ;;  %vm341_vm3 = vcmask 253952  }
  0x1b   : > { %s487_s26 = sshll.u32 %s717_s22, 4  ;;  %v316_v18 = vshrl.u32 %v315_v11, 7  ;;  %s760_s30 = sand.u32 1, %s654_s19  }
  0x1c   : > { %s844_s9 = smov (!%p259_p13, %s484_s9), 2  ;;  %v318_v19 = vstv %s487_s26  ;;  %s366_s8 = scalar_lea.hbm %s835_s4, %s717_s22 }
  0x1d   : > { %s485_s10 = sshll.u32 %s844_s9, 3  ;;  %v317_v24 = vadd.s32 8, %v316_v18  ;;  %v319_v27 = vadd.s32 %v318_v19, %v316_v18  ;;  %s379_s11 = scalar_lea.hbm %s836_s5, %s717_s22 }
  0x1e   : > { %s262_s13 = scalar_lea.vmem %s832_s1, %s485_s10  ;;  %s247_s12 = scalar_lea.vmem [#allocation5], %s760_s30 }
  0x1f   : > { %v270_v1 = vld [vmem:[%s262_s13] sm:$0xff]  ;;  %v271_v2 = vld [vmem:[%s262_s13 + $0x8] sm:$0xff]  ;;  %v304_v17 = vstv %s268_s23  ;;  %v320_v31 = vadd.s32 %v318_v19, %v317_v24  ;;  %vm321_vm0 = vcmp.lt.s32.totalorder %v319_v27, 24  ;;  %s771_s13 = sshll.u32 %s247_s12, 4  ;;  %s773_s14 = sshll.u32 %s366_s8, 4  ;;  %s369_s13 = int_to_ptr.vmem [resolvable:$true] %s771_s13  ;;  %s371_s14 = int_to_ptr.hbm [resolvable:$true] %s773_s14 }
  0x20   : > { %275 = vperm.xlu0 %546, %v270_v1   ;;  %v309_v23 = vstv %s486_s25  ;;  %s253_s15 = scalar_lea.vmem [#allocation6], %s760_s30  ;;  %s778_s17 = sshll.u32 %s379_s11, 4  ;;  %s384_s17 = int_to_ptr.hbm [resolvable:$true] %s778_s17 }
  0x21   : > { %vm322_vm1 = vcmp.lt.s32.totalorder %v320_v31, 24  ;;  %s776_s16 = sshll.u32 %s253_s15, 4  ;;  %s354_s22 = scalar_lea.sflag [#allocation3], %s760_s30  ;;  %s382_s16 = int_to_ptr.vmem [resolvable:$true] %s776_s16 }
  0x22   : > { %s578_s23 = sshra.s32 %s371_s14, 4  ;;  %s584_s7 = scalar_lea.hbm %s835_s4, 2  ;;  %s579_s23 = int_to_ptr.hbm [resolvable:$true] %s578_s23 }
  0x23   : > { %s580_s25 = scalar_lea.hbm %s579_s23, 1  ;;  %p585_p3 = scmp.lt.s32.totalorder %s579_s23, %s835_s4 }
  0x24   : > { %p581_p0 = scmp.ne.s32.totalorder %s579_s23, %s580_s25  ;;  %p586_p4 = scmp.lt.s32.totalorder %s584_s7, %s580_s25 }
  0x26   : > { %p582_p1 = pnand %p581_p0, %p734_p5  ;;  %p587_p7 = por %p586_p4, %p585_p3 }
  0x28   : > { %280 = vperm.xlu0 %546, %v271_v2   ;;  %p583_p2 = pneg %p582_p1 }
  0x2a   : > { %p588_p8 = pnand %p587_p7, %p583_p2 }
  0x92   : > { %v276_v5 = vpop.permute.xlu0 %275 }
  0x93   : > { %v286_v6 = vmul.f32 %v547_v3, %v276_v5 }
  0x95   : > { %v292_v7 = vadd.f32 %v548_v4, %v286_v6 }
  0x97   : > { %v294_v8 = vmul.f32 %v292_v7, %v292_v7  ;;  %v296_v9 = vand.u32 2147483647, %v292_v7 }
  0x99   : > { %v298_v10 = vmul.f32 %v296_v9, %v294_v8 }
  0x9a   : > { %v281_v12 = vpop.permute.xlu0 %280 }
  0x9b   : > { %v300_v13 = vsub.f32 %v296_v9, %v298_v10  ;;  %v287_v14 = vmul.f32 %v547_v3, %v281_v12  ;;  %v307_v20 = vadd.f32 %v298_v10, %v296_v9 }
  0x9d   : > { %v302_v15 = vand.u32 2147483647, %v300_v13  ;;  %v293_v16 = vadd.f32 %v548_v4, %v287_v14  ;;  %v310_v28 = vmul.f32 %v309_v23, %v307_v20 }
  0x9f   : > { %v295_v21 = vmul.f32 %v293_v16, %v293_v16  ;;  %v297_v22 = vand.u32 2147483647, %v293_v16  ;;  %v305_v25 = vmul.f32 %v304_v17, %v302_v15 }
  0xa1   : > { %v299_v26 = vmul.f32 %v297_v22, %v295_v21  ;;  %v312_v32 = vadd.f32 %v310_v28, %v305_v25 }
  0xa3   : > { %v301_v29 = vsub.f32 %v297_v22, %v299_v26  ;;  %v308_v30 = vadd.f32 %v299_v26, %v297_v22  ;;  %v327_v36 = vsel %vm321_vm0, %v312_v32, inf  ;;  %v329_v37 = vsel %vm321_vm0, %v312_v32, -inf }
  0xa4   : > { %v332_v41 = vsel %vm331_vm2, %v327_v36, inf  ;;  %v343_v43 = vsel %vm331_vm2, %v329_v37, -inf }
  0xa5   : > { %v303_v33 = vand.u32 2147483647, %v301_v29  ;;  %v311_v35 = vmul.f32 %v309_v23, %v308_v30 }
  0xa7   : > { %v306_v34 = vmul.f32 %v304_v17, %v303_v33 }
  0xa9   : > { %v313_v38 = vadd.f32 %v311_v35, %v306_v34 }
  0xab   : > { %v328_v39 = vsel %vm322_vm1, %v313_v38, inf  ;;  %v330_v40 = vsel %vm322_vm1, %v313_v38, -inf }
  0xac   : > { %v333_v42 = vsel %vm331_vm2, %v328_v39, inf  ;;  %v344_v44 = vsel %vm331_vm2, %v330_v40, -inf }
  0xad   : > { %v334_v45 = vmin.f32 %v332_v41, %v333_v42  ;;  %v345_v46 = vmax.f32 %v343_v43, %v344_v44 }
  0xaf   : > { %v335_v47 = vrot.slane %v334_v45, 4  ;;  %v346_v48 = vrot.slane %v345_v46, 4 }
  0xb1   : > { %v336_v49 = vmin.f32 %v334_v45, %v335_v47  ;;  %v347_v50 = vmax.f32 %v345_v46, %v346_v48 }
  0xb3   : > { %v337_v51 = vrot.slane %v336_v49, 2  ;;  %v348_v52 = vrot.slane %v347_v50, 2 }
  0xb5   : > { %v338_v53 = vmin.f32 %v336_v49, %v337_v51  ;;  %v349_v54 = vmax.f32 %v347_v50, %v348_v52 }
  0xb7   : > { %v339_v55 = vrot.slane %v338_v53, 1  ;;  %v350_v56 = vrot.slane %v349_v54, 1 }
  0xb9   : > { %v340_v57 = vmin.f32 %v338_v53, %v339_v55  ;;  %v351_v58 = vmax.f32 %v349_v54, %v350_v56 }
  0xbb   : > { %342 = vst.msk [vmem:[%s247_s12] sm:$0x1] %vm341_vm3, %v340_v57 }
  0xbc   : > { %591 = shalt.err (!%p588_p8)
}
  0xbd   : > { %494 = dma.vmem_to_hbm [thread:$0]  (%p734_p5), %s369_s13, 16, %s371_s14, %s354_s22   ;;  %352 = vst.msk [vmem:[%s253_s15] sm:$0x1] %vm341_vm3, %v351_v58 }
  0xbe   : > { %s358_s10 = scalar_lea.sflag [#allocation7], %s760_s30  ;;  %s606_s11 = sshra.s32 %s384_s17, 4  ;;  %s607_s11 = int_to_ptr.hbm [resolvable:$true] %s606_s11 }
  0xbf   : > { %s608_s12 = scalar_lea.hbm %s607_s11, 1  ;;  %s612_s26 = scalar_lea.hbm %s836_s5, 2 }
  0xc0   : > { %p609_p9 = scmp.ne.s32.totalorder %s607_s11, %s608_s12  ;;  %p613_p12 = scmp.lt.s32.totalorder %s607_s11, %s836_s5 }
  0xc1   : > { %p614_p13 = scmp.lt.s32.totalorder %s612_s26, %s608_s12 }
  0xc2   : > { %p610_p10 = pnand %p609_p9, %p734_p5 }
  0xc3   : > { %p615_p0 = por %p614_p13, %p613_p12 }
  0xc4   : > { %p611_p11 = pneg %p610_p10 }
  0xc6   : > { %p616_p1 = pnand %p615_p0, %p611_p11 }
  0xc8   : > { %619 = shalt.err (!%p616_p1)
}
  0xc9   : > { %495 = dma.vmem_to_hbm [thread:$0]  (%p734_p5), %s382_s16, 16, %s384_s17, %s358_s10  }
  0xca PF: > { %p511_p2 = scmp.ge.s32.totalorder %s662_s21, 2  ;;  %s395_s30 = sand.u32 1, %s650_s18  }
  0xcb   : > { %s396_s13 = scalar_lea.sflag [#allocation3], %s395_s30 }
  0xcc   : > { %p503_p3 = pnand %p511_p2, %p738_p6 }
  0xce   : > { %p504_p4 = pneg %p503_p3 }
  0xd0   : > { %641 = dma.done.wait (%p504_p4), %s396_s13, 16  }
  0xd1   : > { %643 = vsyncadd (%p504_p4), %s396_s13, 4294967280  ;;  %s405_s14 = scalar_lea.sflag [#allocation7], %s395_s30 }
  0xd2   : > { %645 = dma.done.wait (%p504_p4), %s405_s14, 16  }
  0xd3   : > { %647 = vsyncadd (%p504_p4), %s405_s14, 4294967280  ;;  %p20_p5 = scmp.ge.s32.totalorder %s721_s24, 4   ;;  %s839_s18 = smov %s654_s19 }
  0xd4   : > { %s840_s19 = smov %s658_s20  ;;  %s841_s20 = smov %s732_s27 }
  0xd5   : > { %s842_s21 = smov %s721_s24  ;;  %22 = sbr.rel (!%p20_p5) target bundleno = 6 (0x6), region = 93 }
  0xda   :  { %410 = vsyncpa [#allocation3], 1 }
  0xdb   :  { %412 = vsyncpa [#allocation3 + $0x1], 1 }
  0xdc   :  { %413 = vsyncpa [#allocation7], 1 }
  0xdd   :  { %415 = vsyncpa [#allocation7 + $0x1], 1 }
  0xde   :  { %416 = vsyncpa [#allocation4], 1 }
  0xdf   :  { %418 = vsyncpa [#allocation4 + $0x1], 1 }

</bundles_post_ra>
